<compile_context>
chip_gen: v6e
topology: v6e:2x2x1
jax: 0.10.0
libtpu: 0.0.40
codegen_flags: <defaults>
</compile_context>

<pallas_src>
import jax
import jax.numpy as jnp
from jax.experimental import pallas as pl
from jax.experimental.pallas import tpu as pltpu

_LANES = 128
_SUBLANES = 8


def _round_up(n, m):
    return (n + m - 1) // m * m


def mlp_kernel(x_ref, w1_ref, b1_ref, w2_ref, b2_ref, o_ref):
    # x_ref: [TB, K]     (K = 300, unpadded; Mosaic masks the partial lane group)
    # w1_ref: [K, H], b1_ref: [1, H]            (f32 bias)
    # w2_ref: [H, C_pad], b2_ref: [1, C_pad]    (padded cols of b2 are -1e30)
    # o_ref:  [TB, C]    (C = 5, unpadded output store)
    num_c = o_ref.shape[1]

    h = jnp.dot(x_ref[...], w1_ref[...], preferred_element_type=jnp.float32)
    h = jnp.maximum(h + b1_ref[...], 0.0)                       # bias + ReLU (f32)

    logits = jnp.dot(h.astype(w2_ref.dtype), w2_ref[...],
                     preferred_element_type=jnp.float32) + b2_ref[...]
    # Padded class columns equal -1e30 (mask folded into b2) -> exp underflows to 0.

    m = jnp.max(logits, axis=1, keepdims=True)
    e = jnp.exp(logits - m)
    denom = jnp.sum(e, axis=1, keepdims=True)
    r = pl.reciprocal(denom, approx=True)        # EUP slot
    r = r * (2.0 - denom * r)                    # one Newton step -> ~f32-exact
    o_ref[...] = e[:, :num_c] * r                # narrow (TB, C) store, 20 B/row


def pack_params(w1, b1, w2, b2, *, matmul_dtype=jnp.float32):
    """One-time parameter packing (hoisted out of the forward pass).

    Pads only the class dim of w2/b2 to a full lane group and folds the
    softmax padding mask into b2.  Matmul operands are stored in
    `matmul_dtype` (f32 for PyTorch parity, bf16 to halve weight/x traffic);
    biases stay f32.
    """
    K, H = w1.shape
    H2, C = w2.shape
    assert H == H2
    C_pad = _round_up(C, _LANES)

    w1_p = jnp.asarray(w1, matmul_dtype)
    b1_p = jnp.asarray(b1, jnp.float32).reshape(1, H)
    w2_p = jnp.zeros((H, C_pad), matmul_dtype).at[:, :C].set(
        jnp.asarray(w2, matmul_dtype))
    b2_p = jnp.full((1, C_pad), -1e30, jnp.float32).at[0, :C].set(
        jnp.asarray(b2, jnp.float32).reshape(-1))
    return (w1_p, b1_p, w2_p, b2_p, C)


def _choose_tiling(batch, block_b):
    """Batch tile TB (multiple of 8) and padded batch size.

    TB is capped at ~ceil(B/2) so the grid has >= 2 steps and the 'parallel'
    batch axis can be sharded across both TensorCores on v7x."""
    b8 = _round_up(batch, _SUBLANES)
    tb_cap = _round_up(b8 // 2, _SUBLANES) if b8 >= 2 * _SUBLANES else b8
    tb = max(_SUBLANES, min(_round_up(block_b, _SUBLANES), tb_cap))
    b_pad = _round_up(b8, tb)
    return tb, b_pad


def mlp_forward(x, packed_params, *, block_b=1024):
    w1_p, b1_p, w2_p, b2_p, C = packed_params
    matmul_dtype = w1_p.dtype
    B, K = x.shape
    K2, H = w1_p.shape
    assert K == K2
    C_pad = w2_p.shape[1]

    TB, B_pad = _choose_tiling(B, block_b)

    # Feed x in the matmul dtype straight from HBM (no K padding, no extra copy
    # in the f32 case).  Only pad the batch dim if TB doesn't divide it.
    x_in = x.astype(matmul_dtype)
    if B_pad != B:
        x_in = jnp.pad(x_in, ((0, B_pad - B), (0, 0)))

    # Scoped-VMEM need: double-buffered x/out blocks + resident weights.
    itemsize = jnp.dtype(matmul_dtype).itemsize
    vmem_need = (2 * TB * K * itemsize + 2 * TB * C * 4
                 + (K * H + H * C_pad) * itemsize + (H + C_pad) * 4)
    compiler_kwargs = dict(dimension_semantics=("parallel",))
    if vmem_need > (12 << 20):   # only matters when sweeping very large TB (v5e)
        compiler_kwargs["vmem_limit_bytes"] = int(min(2 * vmem_need, 48 << 20))

    out = pl.pallas_call(
        mlp_kernel,
        out_shape=jax.ShapeDtypeStruct((B_pad, C), jnp.float32),
        grid=(B_pad // TB,),
        in_specs=[
            pl.BlockSpec((TB, K), lambda i: (i, 0)),     # x: streamed, unpadded K
            pl.BlockSpec((K, H), lambda i: (0, 0)),      # w1: VMEM-resident
            pl.BlockSpec((1, H), lambda i: (0, 0)),      # b1: VMEM-resident
            pl.BlockSpec((H, C_pad), lambda i: (0, 0)),  # w2: VMEM-resident
            pl.BlockSpec((1, C_pad), lambda i: (0, 0)),  # b2: VMEM-resident (mask folded in)
        ],
        out_specs=pl.BlockSpec((TB, C), lambda i: (i, 0)),
        compiler_params=pltpu.CompilerParams(**compiler_kwargs),
    )(x_in, w1_p, b1_p, w2_p, b2_p)

    return out if B_pad == B else out[:B]


def init_params(key, input_size, hidden_size, num_classes):
    # Mimics PyTorch nn.Linear init: uniform(-1/sqrt(fan_in), +1/sqrt(fan_in)).
    k1, k2, k3, k4 = jax.random.split(key, 4)
    lim1 = 1.0 / (input_size ** 0.5)
    lim2 = 1.0 / (hidden_size ** 0.5)
    w1 = jax.random.uniform(k1, (input_size, hidden_size), jnp.float32, -lim1, lim1)
    b1 = jax.random.uniform(k2, (1, hidden_size), jnp.float32, -lim1, lim1)
    w2 = jax.random.uniform(k3, (hidden_size, num_classes), jnp.float32, -lim2, lim2)
    b2 = jax.random.uniform(k4, (1, num_classes), jnp.float32, -lim2, lim2)
    return w1, b1, w2, b2


if __name__ == "__main__":
    input_size = 300
    hidden_size = 128
    num_classes = 5
    batch = 256   # small demo batch -> TB = 128, grid = (2,)

    key = jax.random.PRNGKey(0)
    kx, kp = jax.random.split(key)
    x = jax.random.normal(kx, (batch, input_size), jnp.float32)
    w1, b1, w2, b2 = init_params(kp, input_size, hidden_size, num_classes)

    # Plain-JAX reference (f32).
    ref = jax.nn.softmax(jnp.maximum(x @ w1 + b1, 0.0) @ w2 + b2, axis=1)

    # f32 MXU path (PyTorch-parity semantics).
    params_f32 = pack_params(w1, b1, w2, b2, matmul_dtype=jnp.float32)
    out = jax.block_until_ready(mlp_forward(x, params_f32))
    assert out.shape == (batch, num_classes)
    assert jnp.allclose(out, ref, atol=1e-3, rtol=1e-3)
    assert jnp.allclose(jnp.sum(out, axis=1), 1.0, atol=1e-3)

    # bf16 operand path (x/w1/w2 fed from HBM in bf16); looser tolerance.
    params_bf16 = pack_params(w1, b1, w2, b2, matmul_dtype=jnp.bfloat16)
    out_bf16 = jax.block_until_ready(mlp_forward(x, params_bf16))
    assert out_bf16.shape == (batch, num_classes)
    assert jnp.allclose(out_bf16, ref, atol=5e-2, rtol=0)

    print("KERNEL_OK")
</pallas_src>

<mosaic_0001>
module attributes {stable_mosaic.version = 11 : i64} {
  func.func @mlp_kernel(%arg0: i32, %arg1: memref<128x300xf32, #tpu.memory_space<vmem>>, %arg2: memref<300x128xf32, #tpu.memory_space<vmem>>, %arg3: memref<1x128xf32, #tpu.memory_space<vmem>>, %arg4: memref<128x128xf32, #tpu.memory_space<vmem>>, %arg5: memref<1x128xf32, #tpu.memory_space<vmem>>, %arg6: memref<128x5xf32, #tpu.memory_space<vmem>>) attributes {dimension_semantics = [#tpu.dimension_semantics<parallel>], iteration_bounds = array<i64: 2>, scalar_prefetch = 0 : i64, scratch_operands = 0 : i64, tpu.core_type = #tpu.core_type<tc>, window_params = [{transform_indices = @transform_0, window_bounds = array<i64: 128, 300>}, {pipeline_mode = #tpu.pipeline_mode<synchronous>, transform_indices = @transform_1, window_bounds = array<i64: 300, 128>}, {pipeline_mode = #tpu.pipeline_mode<synchronous>, transform_indices = @transform_2, window_bounds = array<i64: 1, 128>}, {pipeline_mode = #tpu.pipeline_mode<synchronous>, transform_indices = @transform_3, window_bounds = array<i64: 128, 128>}, {pipeline_mode = #tpu.pipeline_mode<synchronous>, transform_indices = @transform_4, window_bounds = array<i64: 1, 128>}, {transform_indices = @transform_5, window_bounds = array<i64: 128, 5>}]} {
    %c0 = arith.constant 0 : index
    %c0_0 = arith.constant 0 : index
    %0 = vector.load %arg1[%c0, %c0_0] : memref<128x300xf32, #tpu.memory_space<vmem>>, vector<128x300xf32>
    %c0_1 = arith.constant 0 : index
    %c0_2 = arith.constant 0 : index
    %1 = vector.load %arg2[%c0_1, %c0_2] : memref<300x128xf32, #tpu.memory_space<vmem>>, vector<300x128xf32>
    %cst = arith.constant dense<0.000000e+00> : vector<128x128xf32>
    %2 = tpu.matmul %0, %1, %cst {dimension_numbers = #tpu.dot_dimension_numbers<[1], [0], [0], [1], [0, 0, 1, 1], [], []>} : vector<128x300xf32>, vector<300x128xf32>, vector<128x128xf32> -> vector<128x128xf32>
    %c0_3 = arith.constant 0 : index
    %c0_4 = arith.constant 0 : index
    %3 = vector.load %arg3[%c0_3, %c0_4] : memref<1x128xf32, #tpu.memory_space<vmem>>, vector<1x128xf32>
    %4 = vector.broadcast %3 : vector<1x128xf32> to vector<128x128xf32>
    %5 = arith.addf %2, %4 : vector<128x128xf32>
    %cst_5 = arith.constant 0.000000e+00 : f32
    %6 = vector.broadcast %cst_5 : f32 to vector<128x128xf32>
    %7 = arith.maximumf %5, %6 : vector<128x128xf32>
    %c0_6 = arith.constant 0 : index
    %c0_7 = arith.constant 0 : index
    %8 = vector.load %arg4[%c0_6, %c0_7] : memref<128x128xf32, #tpu.memory_space<vmem>>, vector<128x128xf32>
    %cst_8 = arith.constant dense<0.000000e+00> : vector<128x128xf32>
    %9 = tpu.matmul %7, %8, %cst_8 {dimension_numbers = #tpu.dot_dimension_numbers<[1], [0], [0], [1], [0, 0, 1, 1], [], []>} : vector<128x128xf32>, vector<128x128xf32>, vector<128x128xf32> -> vector<128x128xf32>
    %c0_9 = arith.constant 0 : index
    %c0_10 = arith.constant 0 : index
    %10 = vector.load %arg5[%c0_9, %c0_10] : memref<1x128xf32, #tpu.memory_space<vmem>>, vector<1x128xf32>
    %11 = vector.broadcast %10 : vector<1x128xf32> to vector<128x128xf32>
    %12 = arith.addf %9, %11 : vector<128x128xf32>
    %cst_11 = arith.constant dense<0xFF800000> : vector<128xf32>
    %13 = vector.multi_reduction <maximumf>, %12, %cst_11 [1] : vector<128x128xf32> to vector<128xf32>
    %14 = vector.shape_cast %13 : vector<128xf32> to vector<128x1xf32>
    %15 = vector.broadcast %14 : vector<128x1xf32> to vector<128x128xf32>
    %16 = arith.subf %12, %15 : vector<128x128xf32>
    %17 = math.exp %16 : vector<128x128xf32>
    %cst_12 = arith.constant dense<0.000000e+00> : vector<128xf32>
    %18 = vector.multi_reduction <add>, %17, %cst_12 [1] : vector<128x128xf32> to vector<128xf32>
    %19 = vector.shape_cast %18 : vector<128xf32> to vector<128x1xf32>
    %20 = tpu.reciprocal %19 {approx = true} : vector<128x1xf32> -> vector<128x1xf32>
    %21 = arith.mulf %19, %20 : vector<128x1xf32>
    %cst_13 = arith.constant 2.000000e+00 : f32
    %22 = vector.broadcast %cst_13 : f32 to vector<128x1xf32>
    %23 = arith.subf %22, %21 : vector<128x1xf32>
    %24 = arith.mulf %20, %23 : vector<128x1xf32>
    %25 = vector.extract_strided_slice %17 {offsets = [0, 0], sizes = [128, 5], strides = [1, 1]} : vector<128x128xf32> to vector<128x5xf32>
    %26 = vector.broadcast %24 : vector<128x1xf32> to vector<128x5xf32>
    %27 = arith.mulf %25, %26 : vector<128x5xf32>
    %c0_14 = arith.constant 0 : index
    %c0_15 = arith.constant 0 : index
    %28 = vector.load %arg6[%c0_14, %c0_15] : memref<128x5xf32, #tpu.memory_space<vmem>>, vector<128x5xf32>
    tpu.vector_store %arg6[%c0_14, %c0_15], %27 {strides = array<i32>} : memref<128x5xf32, #tpu.memory_space<vmem>>, vector<128x5xf32>,
    return
  }
  func.func @transform_0(%arg0: i32) -> (i32, i32) {
    %c0_i32 = arith.constant 0 : i32
    %c0_i32_0 = arith.constant 0 : i32
    return %arg0, %c0_i32 : i32, i32
  }
  func.func @transform_1(%arg0: i32) -> (i32, i32) {
    %c0_i32 = arith.constant 0 : i32
    %c0_i32_0 = arith.constant 0 : i32
    %c0_i32_1 = arith.constant 0 : i32
    return %c0_i32, %c0_i32_0 : i32, i32
  }
  func.func @transform_2(%arg0: i32) -> (i32, i32) {
    %c0_i32 = arith.constant 0 : i32
    %c0_i32_0 = arith.constant 0 : i32
    %c0_i32_1 = arith.constant 0 : i32
    return %c0_i32, %c0_i32_0 : i32, i32
  }
  func.func @transform_3(%arg0: i32) -> (i32, i32) {
    %c0_i32 = arith.constant 0 : i32
    %c0_i32_0 = arith.constant 0 : i32
    %c0_i32_1 = arith.constant 0 : i32
    return %c0_i32, %c0_i32_0 : i32, i32
  }
  func.func @transform_4(%arg0: i32) -> (i32, i32) {
    %c0_i32 = arith.constant 0 : i32
    %c0_i32_0 = arith.constant 0 : i32
    %c0_i32_1 = arith.constant 0 : i32
    return %c0_i32, %c0_i32_0 : i32, i32
  }
  func.func @transform_5(%arg0: i32) -> (i32, i32) {
    %c0_i32 = arith.constant 0 : i32
    %c0_i32_0 = arith.constant 0 : i32
    return %arg0, %c0_i32 : i32, i32
  }
}

</mosaic_0001>

<bundles_post_ra>
// kernel: tpu_custom_call.1
= control target key start
LH: loop header
LB: loop body
LE: loop exit
PB: predicated region body
PF: predicated region fallthrough
CT: control target
= control target key end

     0   :  { %s1483_s18 = smov 0   ;;  %s1890_s0 = inlined_call_operand.vmem [shape: f32[256,300], index: 0, kind: input, shape index: {}]   ;;  %s1891_s1 = inlined_call_operand.vmem [shape: f32[300,128], index: 1, kind: input, shape index: {}]   ;;  %s1892_s2 = inlined_call_operand.vmem [shape: f32[1,128], index: 2, kind: input, shape index: {}]   ;;  %s1893_s3 = inlined_call_operand.vmem [shape: f32[128,128], index: 3, kind: input, shape index: {}]   ;;  %s1894_s4 = inlined_call_operand.vmem [shape: f32[1,128], index: 4, kind: input, shape index: {}]   ;;  %s1895_s5 = inlined_call_operand.vmem [shape: f32[256,5], index: 5, kind: output, shape index: {}]  }
   0x1 LB: > { %s1116_s19 = sadd.s32 4294967295, %s1451_s18   ;;  %p1120_p0 = scmp.ge.s32.totalorder %s1451_s18, 1  ;;  %s1451_s18 = sphi %s1483_s18, %s15_s18  }
   0x2   : > { %p189_p1 = scmp.lt.s32.totalorder %s1451_s18, 3 }
   0x4   : > { %p190_p2 = pnand %p1120_p0, %p189_p1 }
   0x5   : > { %s1121_s26 = sshll.u32 (!%p190_p2), %s1116_s19, 4 }
   0x6   : > { %193 = sbr.rel (%p190_p2) target bundleno = 821 (0x335), region = 40  ;;  %p219_p3 = scmp.lt.s32.totalorder (!%p190_p2), %s1121_s26, 31 }
   0xb   : > { %v310_v0 = vld [vmem:[%s1891_s1 + $0xf8] sm:$0xff]  ;;  %v309_v2 = vld [vmem:[%s1891_s1 + $0xf0] sm:$0xff]  ;;  %v308_v4 = vld [vmem:[%s1891_s1 + $0xe8] sm:$0xff]  ;;  %s1897_s26 = smov (!%p219_p3, %s1121_s26), 31  ;;  %vm373_vm0 = vcmask 1043456   ;;  %vm324_vm1 = vcmask 359424  }
   0xc   : > { %v294_v1 = vld [vmem:[%s1891_s1 + $0x78] sm:$0xff]  ;;  %1146 = vmatprep.subr.mxu0 %v310_v0  ;;  %v293_v3 = vld [vmem:[%s1891_s1 + $0x70] sm:$0xff]  ;;  %v292_v5 = vld [vmem:[%s1891_s1 + $0x68] sm:$0xff]  ;;  %s1372_s14 = smul.u32 24, %s1897_s26  ;;  %s1124_s23 = sshll.u32 %s1897_s26, 3  ;;  %vm1043_vm2 = vcmask 39936  }
   0xd   : > { %1147 = vmatpush3.msra.mxu0 %v294_v1  ;;  %v307_v6 = vld [vmem:[%s1891_s1 + $0xe0] sm:$0xff]  ;;  %v306_v8 = vld [vmem:[%s1891_s1 + $0xd8] sm:$0xff]  ;;  %v305_v10 = vld [vmem:[%s1891_s1 + $0xd0] sm:$0xff]  ;;  %s1837_s27 = scalar_lea.vmem %s1895_s5, %s1124_s23 }
   0xe   : > { %1148 = vmatprep.subr.mxu0 %v309_v2  ;;  %v291_v7 = vld [vmem:[%s1891_s1 + $0x60] sm:$0xff]  ;;  %v290_v9 = vld [vmem:[%s1891_s1 + $0x58] sm:$0xff]  ;;  %v316_v11 = vld [vmem:[%s1891_s1 + $0x128] sm:$0xf]  ;;  %s1545_s8 = scalar_lea.vmem %s1890_s0, %s1372_s14 }
   0xf   : > { %1149 = vmatpush3.msra.mxu0 %v293_v3  ;;  %v289_v12 = vld [vmem:[%s1891_s1 + $0x50] sm:$0xff]  ;;  %1280 = vmatprep.subr.msk.mxu1 %vm373_vm0, %v316_v11  ;;  %v315_v13 = vld [vmem:[%s1891_s1 + $0x120] sm:$0xff]  ;;  %v304_v14 = vld [vmem:[%s1891_s1 + $0xc8] sm:$0xff] }
  0x10   : > { %1150 = vmatprep.subr.mxu0 %v308_v4  ;;  %1281 = vmatpush3.msk.msra.mxu1 %vm373_vm0, %v316_v11  ;;  %v314_v15 = vld [vmem:[%s1891_s1 + $0x118] sm:$0xff]  ;;  %v288_v16 = vld [vmem:[%s1891_s1 + $0x48] sm:$0xff]  ;;  %v303_v17 = vld [vmem:[%s1891_s1 + $0xc0] sm:$0xff] }
  0x11   : > { %1151 = vmatpush3.msra.mxu0 %v292_v5  ;;  %1282 = vmatprep.subr.mxu1 %v315_v13  ;;  %v313_v18 = vld [vmem:[%s1891_s1 + $0x110] sm:$0xff]  ;;  %v287_v19 = vld [vmem:[%s1891_s1 + $0x40] sm:$0xff]  ;;  %v232_v20 = vld [vmem:[%s1545_s8 + $0x8] sm:$0xff] }
  0x12   : > { %1152 = vmatprep.subr.mxu0 %v307_v6  ;;  %1283 = vmatpush3.msra.mxu1 %v315_v13  ;;  %v302_v21 = vld [vmem:[%s1891_s1 + $0xb8] sm:$0xff]  ;;  %v312_v23 = vld [vmem:[%s1891_s1 + $0x108] sm:$0xff]  ;;  %v301_v24 = vld [vmem:[%s1891_s1 + $0xb0] sm:$0xff] }
  0x13   : > { %1153 = vmatpush3.msra.mxu0 %v291_v7  ;;  %1284 = vmatprep.subr.mxu1 %v314_v15  ;;  %v286_v22 = vld [vmem:[%s1891_s1 + $0x38] sm:$0xff]  ;;  %v285_v25 = vld [vmem:[%s1891_s1 + $0x30] sm:$0xff]  ;;  %v311_v26 = vld [vmem:[%s1891_s1 + $0x100] sm:$0xff] }
  0x14   : > { %1154 = vmatprep.subr.mxu0 %v306_v8  ;;  %1285 = vmatpush3.msra.mxu1 %v314_v15  ;;  %v300_v27 = vld [vmem:[%s1891_s1 + $0xa8] sm:$0xff]  ;;  %v233_v29 = vld [vmem:[%s1545_s8 + $0x10] sm:$0xff]  ;;  %v299_v30 = vld [vmem:[%s1891_s1 + $0xa0] sm:$0xff] }
  0x15   : > { %1155 = vmatpush3.msra.mxu0 %v290_v9  ;;  %1286 = vmatprep.subr.mxu1 %v313_v18  ;;  %v284_v28 = vld [vmem:[%s1891_s1 + $0x28] sm:$0xff]  ;;  %v283_v32 = vld [vmem:[%s1891_s1 + $0x20] sm:$0xff]  ;;  %v298_v34 = vld [vmem:[%s1891_s1 + $0x98] sm:$0xff] }
  0x16   : > { %1156 = vmatprep.subr.mxu0 %v305_v10  ;;  %441 = vmatprep.mubr.f32.mxu0 %v232_v20  ;;  %v236_v31 = vld [vmem:[%s1545_s8 + $0x28] sm:$0xff]  ;;  %v239_v33 = vld [vmem:[%s1545_s8 + $0x40] sm:$0xff]  ;;  %v282_v35 = vld [vmem:[%s1891_s1 + $0x18] sm:$0xff] }
  0x17   : > { %1157 = vmatpush3.msra.mxu0 %v289_v12  ;;  %1287 = vmatpush3.msra.mxu1 %v313_v18  ;;  %v297_v36 = vld [vmem:[%s1891_s1 + $0x90] sm:$0xff]  ;;  %v242_v37 = vld [vmem:[%s1545_s8 + $0x58] sm:$0xff]  ;;  %v296_v40 = vld [vmem:[%s1891_s1 + $0x88] sm:$0xff] }
  0x18   : > { %1158 = vmatprep.subr.mxu0 %v304_v14  ;;  %1288 = vmatprep.subr.mxu1 %v312_v23  ;;  %v281_v38 = vld [vmem:[%s1891_s1 + $0x10] sm:$0xff]  ;;  %v280_v41 = vld [vmem:[%s1891_s1 + $0x8] sm:$0xff]  ;;  %v295_v42 = vld [vmem:[%s1891_s1 + $0x80] sm:$0xff] }
  0x19   : > { %1159 = vmatpush3.msra.mxu0 %v288_v16  ;;  %1289 = vmatpush3.msra.mxu1 %v312_v23  ;;  %v245_v39 = vld [vmem:[%s1545_s8 + $0x70] sm:$0xff]  ;;  %v248_v43 = vld [vmem:[%s1545_s8 + $0x88] sm:$0xff]  ;;  %v698_v44 = vld [vmem:[%s1893_s3 + $0x78] sm:$0xff] }
  0x1a   : > { %1160 = vmatprep.subr.mxu0 %v303_v17  ;;  %1290 = vmatprep.subr.mxu1 %v311_v26  ;;  %v279_v45 = vld [vmem:[%s1891_s1] sm:$0xff]  ;;  %v697_v48 = vld [vmem:[%s1893_s3 + $0x70] sm:$0xff]  ;;  %v254_v50 = vld [vmem:[%s1545_s8 + $0xb8] sm:$0xff] }
  0x1b   : > { %1161 = vmatpush3.msra.mxu0 %v287_v19  ;;  %1291 = vmatpush3.msra.mxu1 %v311_v26  ;;  %v251_v46 = vld [vmem:[%s1545_s8 + $0xa0] sm:$0xff]  ;;  %v696_v51 = vld [vmem:[%s1893_s3 + $0x68] sm:$0xff]  ;;  %v257_v52 = vld [vmem:[%s1545_s8 + $0xd0] sm:$0xff] }
  0x1c   : > { %1162 = vmatprep.subr.mxu0 %v302_v21  ;;  %1292 = vmatprep.mubr.msk.f32.mxu1 %vm324_vm1, %v233_v29  ;;  %v231_v47 = vld [vmem:[%s1545_s8] sm:$0xff]  ;;  %v234_v53 = vld [vmem:[%s1545_s8 + $0x18] sm:$0xff]  ;;  %v260_v56 = vld [vmem:[%s1545_s8 + $0xe8] sm:$0xff] }
  0x1d   : > { %1163 = vmatpush3.msra.mxu0 %v286_v22  ;;  %1293 = vmatmul.mubr.msk.f32.vlgmr.msra.gmra.mxu1 %vm324_vm1, %v236_v31  ;;  %v235_v49 = vld [vmem:[%s1545_s8 + $0x20] sm:$0xff]  ;;  %v238_v55 = vld [vmem:[%s1545_s8 + $0x38] sm:$0xff]  ;;  %v237_v59 = vld [vmem:[%s1545_s8 + $0x30] sm:$0xff] }
  0x1e   : > { %1164 = vmatprep.subr.mxu0 %v301_v24  ;;  %1295 = vmatprep.mubr.msk.f32.mxu1 %vm324_vm1, %v239_v33  ;;  %v695_v54 = vld [vmem:[%s1893_s3 + $0x60] sm:$0xff]  ;;  %v694_v57 = vld [vmem:[%s1893_s3 + $0x58] sm:$0xff]  ;;  %v693_v60 = vld [vmem:[%s1893_s3 + $0x50] sm:$0xff] }
  0x1f   : > { %1165 = vmatpush3.msra.mxu0 %v285_v25  ;;  %1316 = vmatprep.subr.mxu1 %v698_v44  ;;  %v263_v58 = vld [vmem:[%s1545_s8 + $0x100] sm:$0xff]  ;;  %v241_v61 = vld [vmem:[%s1545_s8 + $0x50] sm:$0xff]  ;;  %v266_v62 = vld [vmem:[%s1545_s8 + $0x118] sm:$0xff] }
  0x20   : > { %1166 = vmatprep.subr.mxu0 %v300_v27  ;;  %1317 = vmatpush3.msra.mxu1 %v698_v44  ;;  %v692_v63 = vld [vmem:[%s1893_s3 + $0x48] sm:$0xff]  ;;  %v269_v0 = vld [vmem:[%s1545_s8 + $0x130] sm:$0xff]  ;;  %v691_v2 = vld [vmem:[%s1893_s3 + $0x40] sm:$0xff] }
  0x21   : > { %1167 = vmatpush3.msra.mxu0 %v284_v28  ;;  %1296 = vmatmul.mubr.msk.f32.gmra.mxu1 %vm324_vm1, %v242_v37  ;;  %v240_v1 = vld [vmem:[%s1545_s8 + $0x48] sm:$0xff]  ;;  %v690_v5 = vld [vmem:[%s1893_s3 + $0x38] sm:$0xff]  ;;  %v275_v6 = vld [vmem:[%s1545_s8 + $0x160] sm:$0xff] }
  0x22   : > { %1168 = vmatprep.subr.mxu0 %v299_v30  ;;  %1298 = vmatprep.mubr.msk.f32.mxu1 %vm324_vm1, %v245_v39  ;;  %v244_v3 = vld [vmem:[%s1545_s8 + $0x68] sm:$0xff]  ;;  %v243_v7 = vld [vmem:[%s1545_s8 + $0x60] sm:$0xff]  ;;  %v278_v9 = vld [vmem:[%s1545_s8 + $0x178] sm:$0xff] }
  0x23   : > { %1169 = vmatpush3.msra.mxu0 %v283_v32  ;;  %1318 = vmatprep.subr.mxu1 %v697_v48  ;;  %v272_v4 = vld [vmem:[%s1545_s8 + $0x148] sm:$0xff]  ;;  %v247_v8 = vld [vmem:[%s1545_s8 + $0x80] sm:$0xff]  ;;  %v246_v10 = vld [vmem:[%s1545_s8 + $0x78] sm:$0xff] }
  0x24   : > { %1170 = vmatprep.subr.mxu0 %v298_v34  ;;  %1319 = vmatpush3.msra.mxu1 %v697_v48  ;;  %v250_v11 = vld [vmem:[%s1545_s8 + $0x98] sm:$0xff]  ;;  %v249_v12 = vld [vmem:[%s1545_s8 + $0x90] sm:$0xff]  ;;  %v252_v14 = vld [vmem:[%s1545_s8 + $0xa8] sm:$0xff] }
  0x25   : > { %1171 = vmatpush3.msra.mxu0 %v282_v35  ;;  %1299 = vmatmul.mubr.msk.f32.gmra.mxu1 %vm324_vm1, %v248_v43  ;;  %v253_v13 = vld [vmem:[%s1545_s8 + $0xb0] sm:$0xff]  ;;  %v256_v15 = vld [vmem:[%s1545_s8 + $0xc8] sm:$0xff]  ;;  %v255_v16 = vld [vmem:[%s1545_s8 + $0xc0] sm:$0xff] }
  0x26   : > { %1172 = vmatprep.subr.mxu0 %v297_v36  ;;  %1301 = vmatprep.mubr.msk.f32.mxu1 %vm324_vm1, %v251_v46  ;;  %v259_v17 = vld [vmem:[%s1545_s8 + $0xe0] sm:$0xff]  ;;  %v258_v18 = vld [vmem:[%s1545_s8 + $0xd8] sm:$0xff]  ;;  %v261_v20 = vld [vmem:[%s1545_s8 + $0xf0] sm:$0xff] }
  0x27   : > { %1173 = vmatpush3.msra.mxu0 %v281_v38  ;;  %1320 = vmatprep.subr.mxu1 %v696_v51  ;;  %v262_v19 = vld [vmem:[%s1545_s8 + $0xf8] sm:$0xff]  ;;  %v265_v21 = vld [vmem:[%s1545_s8 + $0x110] sm:$0xff]  ;;  %v264_v22 = vld [vmem:[%s1545_s8 + $0x108] sm:$0xff] }
  0x28   : > { %1174 = vmatprep.subr.mxu0 %v296_v40  ;;  %1321 = vmatpush3.msra.mxu1 %v696_v51  ;;  %v268_v23 = vld [vmem:[%s1545_s8 + $0x128] sm:$0xff]  ;;  %v267_v24 = vld [vmem:[%s1545_s8 + $0x120] sm:$0xff]  ;;  %v270_v26 = vld [vmem:[%s1545_s8 + $0x138] sm:$0xff] }
  0x29   : > { %1175 = vmatpush3.msra.mxu0 %v280_v41  ;;  %1302 = vmatmul.mubr.msk.f32.gmra.mxu1 %vm324_vm1, %v254_v50  ;;  %v271_v25 = vld [vmem:[%s1545_s8 + $0x140] sm:$0xff]  ;;  %v274_v27 = vld [vmem:[%s1545_s8 + $0x158] sm:$0xff]  ;;  %v273_v28 = vld [vmem:[%s1545_s8 + $0x150] sm:$0xff] }
  0x2a   : > { %1176 = vmatprep.subr.mxu0 %v295_v42  ;;  %1304 = vmatprep.mubr.msk.f32.mxu1 %vm324_vm1, %v257_v52  ;;  %v277_v29 = vld [vmem:[%s1545_s8 + $0x170] sm:$0xff]  ;;  %v276_v30 = vld [vmem:[%s1545_s8 + $0x168] sm:$0xff]  ;;  %v687_v33 = vld [vmem:[%s1893_s3 + $0x20] sm:$0xff] }
  0x2b   : > { %1177 = vmatpush3.msra.mxu0 %v279_v45  ;;  %1322 = vmatprep.subr.mxu1 %v695_v54  ;;  %v689_v31 = vld [vmem:[%s1893_s3 + $0x30] sm:$0xff]  ;;  %v688_v32 = vld [vmem:[%s1893_s3 + $0x28] sm:$0xff]  ;;  %v686_v34 = vld [vmem:[%s1893_s3 + $0x18] sm:$0xff] }
  0x2c   : > { %442 = vmatmul.mubr.f32.vlgmr.msra.gmra.mxu0 %v231_v47  ;;  %1323 = vmatpush3.msra.mxu1 %v695_v54  ;;  %v685_v35 = vld [vmem:[%s1893_s3 + $0x10] sm:$0xff]  ;;  %v684_v36 = vld [vmem:[%s1893_s3 + $0x8] sm:$0xff]  ;;  %v683_v37 = vld [vmem:[%s1893_s3] sm:$0xff] }
  0x2d   : > { %446 = vmatprep.mubr.f32.mxu0 %v235_v49  ;;  %1305 = vmatmul.mubr.msk.f32.gmra.mxu1 %vm324_vm1, %v260_v56  ;;  %v1728_v41 = vld [vmem:[%s1892_s2] ss:$0 sm:$0xff] }
  0x2e   : > { %1324 = vmatprep.subr.mxu1 %v694_v57  ;;  %1307 = vmatprep.mubr.msk.f32.mxu1 %vm324_vm1, %v263_v58 }
  0x2f   : > { %1325 = vmatpush3.msra.mxu1 %v694_v57 }
  0x30   : > { %447 = vmatmul.mubr.f32.gmra.mxu0 %v234_v53  ;;  %1326 = vmatprep.subr.mxu1 %v693_v60 }
  0x31   : > { %451 = vmatprep.mubr.f32.mxu0 %v238_v55  ;;  %1327 = vmatpush3.msra.mxu1 %v693_v60 }
  0x32   : > { %1308 = vmatmul.mubr.msk.f32.gmra.mxu1 %vm324_vm1, %v266_v62  ;;  %1328 = vmatprep.subr.mxu1 %v692_v63 }
  0x33   : > { %1310 = vmatprep.mubr.msk.f32.mxu1 %vm324_vm1, %v269_v0  ;;  %1329 = vmatpush3.msra.mxu1 %v692_v63 }
  0x34   : > { %452 = vmatmul.mubr.f32.gmra.mxu0 %v237_v59  ;;  %1330 = vmatprep.subr.mxu1 %v691_v2 }
  0x35   : > { %456 = vmatprep.mubr.f32.mxu0 %v241_v61  ;;  %1331 = vmatpush3.msra.mxu1 %v691_v2 }
  0x36   : > { %1311 = vmatmul.mubr.msk.f32.gmra.mxu1 %vm324_vm1, %v272_v4  ;;  %1332 = vmatprep.subr.mxu1 %v690_v5 }
  0x37   : > { %1313 = vmatprep.mubr.msk.f32.mxu1 %vm324_vm1, %v275_v6  ;;  %1333 = vmatpush3.msra.mxu1 %v690_v5 }
  0x38   : > { %457 = vmatmul.mubr.f32.gmra.mxu0 %v240_v1  ;;  %1334 = vmatprep.subr.mxu1 %v689_v31 }
  0x39   : > { %461 = vmatprep.mubr.f32.mxu0 %v244_v3  ;;  %1335 = vmatpush3.msra.mxu1 %v689_v31 }
  0x3a   : > { %1314 = vmatmul.mubr.msk.f32.gmra.mxu1 %vm324_vm1, %v278_v9  ;;  %1336 = vmatprep.subr.mxu1 %v688_v32 }
  0x3b   : > { %1337 = vmatpush3.msra.mxu1 %v688_v32 }
  0x3c   : > { %462 = vmatmul.mubr.f32.gmra.mxu0 %v243_v7  ;;  %1338 = vmatprep.subr.mxu1 %v687_v33 }
  0x3d   : > { %466 = vmatprep.mubr.f32.mxu0 %v247_v8  ;;  %1339 = vmatpush3.msra.mxu1 %v687_v33 }
  0x3e   : > { %1340 = vmatprep.subr.mxu1 %v686_v34 }
  0x3f   : > { %1341 = vmatpush3.msra.mxu1 %v686_v34 }
  0x40   : > { %467 = vmatmul.mubr.f32.gmra.mxu0 %v246_v10  ;;  %1342 = vmatprep.subr.mxu1 %v685_v35 }
  0x41   : > { %471 = vmatprep.mubr.f32.mxu0 %v250_v11  ;;  %1343 = vmatpush3.msra.mxu1 %v685_v35 }
  0x42   : > { %1344 = vmatprep.subr.mxu1 %v684_v36 }
  0x43   : > { %1345 = vmatpush3.msra.mxu1 %v684_v36 }
  0x44   : > { %472 = vmatmul.mubr.f32.gmra.mxu0 %v249_v12  ;;  %1346 = vmatprep.subr.mxu1 %v683_v37 }
  0x45   : > { %476 = vmatprep.mubr.f32.mxu0 %v253_v13  ;;  %1347 = vmatpush3.msra.mxu1 %v683_v37 }
  0x48   : > { %477 = vmatmul.mubr.f32.gmra.mxu0 %v252_v14 }
  0x49   : > { %481 = vmatprep.mubr.f32.mxu0 %v256_v15 }
  0x4c   : > { %482 = vmatmul.mubr.f32.gmra.mxu0 %v255_v16 }
  0x4d   : > { %486 = vmatprep.mubr.f32.mxu0 %v259_v17 }
  0x50   : > { %487 = vmatmul.mubr.f32.gmra.mxu0 %v258_v18 }
  0x51   : > { %491 = vmatprep.mubr.f32.mxu0 %v262_v19 }
  0x54   : > { %492 = vmatmul.mubr.f32.gmra.mxu0 %v261_v20 }
  0x55   : > { %496 = vmatprep.mubr.f32.mxu0 %v265_v21 }
  0x58   : > { %497 = vmatmul.mubr.f32.gmra.mxu0 %v264_v22 }
  0x59   : > { %501 = vmatprep.mubr.f32.mxu0 %v268_v23 }
  0x5c   : > { %502 = vmatmul.mubr.f32.gmra.mxu0 %v267_v24 }
  0x5d   : > { %506 = vmatprep.mubr.f32.mxu0 %v271_v25 }
  0x60   : > { %507 = vmatmul.mubr.f32.gmra.mxu0 %v270_v26 }
  0x61   : > { %511 = vmatprep.mubr.f32.mxu0 %v274_v27 }
  0x64   : > { %512 = vmatmul.mubr.f32.gmra.mxu0 %v273_v28 }
  0x65   : > { %516 = vmatprep.mubr.f32.mxu0 %v277_v29 }
  0x68   : > { %517 = vmatmul.mubr.f32.gmra.mxu0 %v276_v30 }
  0xdd   : > { %v1294_v39 = vpop.f32.mrf.mxu1 }
  0xdf   : > { %v588_v44 = vpop.f32.mrf.mxu1 }
  0xe1   : > { %v1297_v50 = vpop.f32.mrf.mxu1 }
  0xe3   : > { %v598_v57 = vpop.f32.mrf.mxu1 }
  0xe5   : > { %v1300_v0 = vpop.f32.mrf.mxu1 }
  0xe7   : > { %v608_v7 = vpop.f32.mrf.mxu1 }
  0xe9   : > { %v1303_v14 = vpop.f32.mrf.mxu1 }
  0xeb   : > { %v618_v21 = vpop.f32.mrf.mxu1 }
  0xec   : > { %v1178_v38 = vpop.f32.mrf.mxu0 }
  0xed   : > { %v1306_v28 = vpop.f32.mrf.mxu1 }
  0xee   : > { %v1179_v40 = vpop.f32.mrf.mxu0 }
  0xef   : > { %v1180_v42 = vadd.f32 %v1179_v40, %v1178_v38  ;;  %v628_v35 = vpop.f32.mrf.mxu1 }
  0xf0   : > { %v1181_v43 = vpop.f32.mrf.mxu0 }
  0xf1   : > { %v444_v45 = vadd.f32 %v1180_v42, %v1728_v41 }
  0xf2   : > { %v1182_v46 = vpop.f32.mrf.mxu0 }
  0xf3   : > { %v1183_v47 = vadd.f32 %v1182_v46, %v1181_v43  ;;  %v589_v48 = vadd.f32 %v588_v44, %v444_v45  ;;  %v1309_v43 = vpop.f32.mrf.mxu1 }
  0xf4   : > { %v1184_v49 = vpop.f32.mrf.mxu0 }
  0xf5   : > { %v449_v51 = vadd.f32 %v1183_v47, %v1728_v41  ;;  %v667_v52 = vmax.f32 %v589_v48, 0.0 }
  0xf6   : > { %v1185_v53 = vpop.f32.mrf.mxu0 }
  0xf7   : > { %v594_v54 = vadd.f32 %v1294_v39, %v449_v51  ;;  %v1186_v55 = vadd.f32 %v1185_v53, %v1184_v49  ;;  %1348 = vmatprep.mubr.f32.mxu1 %v667_v52 }
  0xf8   : > { %v1187_v56 = vpop.f32.mrf.mxu0 }
  0xf9   : > { %v668_v58 = vmax.f32 %v594_v54, 0.0  ;;  %v454_v59 = vadd.f32 %v1186_v55, %v1728_v41 }
  0xfa   : > { %v1188_v60 = vpop.f32.mrf.mxu0 }
  0xfb   : > { %v1189_v61 = vadd.f32 %v1188_v60, %v1187_v56  ;;  %v599_v62 = vadd.f32 %v598_v57, %v454_v59  ;;  %1349 = vmatmul.mubr.f32.vlgmr.msra.gmra.mxu1 %v668_v58 }
  0xfc   : > { %v1190_v63 = vpop.f32.mrf.mxu0 }
  0xfd   : > { %v459_v1 = vadd.f32 %v1189_v61, %v1728_v41  ;;  %v669_v2 = vmax.f32 %v599_v62, 0.0 }
  0xfe   : > { %v1191_v3 = vpop.f32.mrf.mxu0 }
  0xff   : > { %v1192_v4 = vadd.f32 %v1191_v3, %v1190_v63  ;;  %1351 = vmatprep.mubr.f32.mxu1 %v669_v2  ;;  %v604_v5 = vadd.f32 %v1297_v50, %v459_v1  ;;  %v638_v50 = vpop.f32.mrf.mxu1 }
 0x100   : > { %v1193_v6 = vpop.f32.mrf.mxu0 }
 0x101   : > { %v464_v8 = vadd.f32 %v1192_v4, %v1728_v41  ;;  %v670_v9 = vmax.f32 %v604_v5, 0.0  ;;  %v1312_v57 = vpop.f32.mrf.mxu1 }
 0x102   : > { %v1194_v10 = vpop.f32.mrf.mxu0 }
 0x103   : > { %v1195_v11 = vadd.f32 %v1194_v10, %v1193_v6  ;;  %v609_v12 = vadd.f32 %v608_v7, %v464_v8  ;;  %1352 = vmatmul.mubr.f32.gmra.mxu1 %v670_v9 }
 0x104   : > { %v1196_v13 = vpop.f32.mrf.mxu0 }
 0x105   : > { %v469_v15 = vadd.f32 %v1195_v11, %v1728_v41  ;;  %v671_v16 = vmax.f32 %v609_v12, 0.0 }
 0x106   : > { %v1197_v17 = vpop.f32.mrf.mxu0 }
 0x107   : > { %v1198_v18 = vadd.f32 %v1197_v17, %v1196_v13  ;;  %1354 = vmatprep.mubr.f32.mxu1 %v671_v16  ;;  %v614_v19 = vadd.f32 %v1300_v0, %v469_v15  ;;  %v648_v0 = vpop.f32.mrf.mxu1 }
 0x108   : > { %v1199_v20 = vpop.f32.mrf.mxu0 }
 0x109   : > { %v474_v22 = vadd.f32 %v1198_v18, %v1728_v41  ;;  %v672_v23 = vmax.f32 %v614_v19, 0.0  ;;  %v1315_v7 = vpop.f32.mrf.mxu1 }
 0x10a   : > { %v1200_v24 = vpop.f32.mrf.mxu0 }
 0x10b   : > { %v1201_v25 = vadd.f32 %v1200_v24, %v1199_v20  ;;  %v619_v26 = vadd.f32 %v618_v21, %v474_v22  ;;  %1355 = vmatmul.mubr.f32.gmra.mxu1 %v672_v23  ;;  %v1143_v24 = vld [vmem:[%s1894_s4] ss:$0 sm:$0xff] }
 0x10c   : > { %v1202_v27 = vpop.f32.mrf.mxu0 }
 0x10d   : > { %v479_v29 = vadd.f32 %v1201_v25, %v1728_v41  ;;  %v673_v30 = vmax.f32 %v619_v26, 0.0 }
 0x10e   : > { %v1203_v31 = vpop.f32.mrf.mxu0 }
 0x10f   : > { %v1204_v32 = vadd.f32 %v1203_v31, %v1202_v27  ;;  %1357 = vmatprep.mubr.f32.mxu1 %v673_v30  ;;  %v624_v33 = vadd.f32 %v1303_v14, %v479_v29  ;;  %v658_v14 = vpop.f32.mrf.mxu1 }
 0x110   : > { %v1205_v34 = vpop.f32.mrf.mxu0 }
 0x111   : > { %v484_v36 = vadd.f32 %v1204_v32, %v1728_v41  ;;  %v674_v37 = vmax.f32 %v624_v33, 0.0 }
 0x112   : > { %v1206_v38 = vpop.f32.mrf.mxu0 }
 0x113   : > { %v1207_v39 = vadd.f32 %v1206_v38, %v1205_v34  ;;  %v629_v40 = vadd.f32 %v628_v35, %v484_v36  ;;  %1358 = vmatmul.mubr.f32.gmra.mxu1 %v674_v37 }
 0x114   : > { %v1208_v42 = vpop.f32.mrf.mxu0 }
 0x115   : > { %v489_v44 = vadd.f32 %v1207_v39, %v1728_v41  ;;  %v675_v45 = vmax.f32 %v629_v40, 0.0 }
 0x116   : > { %v1209_v46 = vpop.f32.mrf.mxu0 }
 0x117   : > { %v1210_v47 = vadd.f32 %v1209_v46, %v1208_v42  ;;  %1360 = vmatprep.mubr.f32.mxu1 %v675_v45  ;;  %v634_v48 = vadd.f32 %v1306_v28, %v489_v44 }
 0x118   : > { %v1211_v49 = vpop.f32.mrf.mxu0 }
 0x119   : > { %v494_v51 = vadd.f32 %v1210_v47, %v1728_v41  ;;  %v676_v52 = vmax.f32 %v634_v48, 0.0 }
 0x11a   : > { %v1212_v53 = vpop.f32.mrf.mxu0 }
 0x11b   : > { %v1213_v54 = vadd.f32 %v1212_v53, %v1211_v49  ;;  %v639_v55 = vadd.f32 %v638_v50, %v494_v51  ;;  %1361 = vmatmul.mubr.f32.gmra.mxu1 %v676_v52 }
 0x11c   : > { %v1214_v56 = vpop.f32.mrf.mxu0 }
 0x11d   : > { %v499_v58 = vadd.f32 %v1213_v54, %v1728_v41  ;;  %v677_v59 = vmax.f32 %v639_v55, 0.0 }
 0x11e   : > { %v1215_v60 = vpop.f32.mrf.mxu0 }
 0x11f   : > { %v1216_v61 = vadd.f32 %v1215_v60, %v1214_v56  ;;  %1363 = vmatprep.mubr.f32.mxu1 %v677_v59  ;;  %v644_v62 = vadd.f32 %v1309_v43, %v499_v58 }
 0x120   : > { %v1217_v63 = vpop.f32.mrf.mxu0 }
 0x121   : > { %v504_v1 = vadd.f32 %v1216_v61, %v1728_v41  ;;  %v678_v2 = vmax.f32 %v644_v62, 0.0 }
 0x122   : > { %v1218_v3 = vpop.f32.mrf.mxu0 }
 0x123   : > { %v1219_v4 = vadd.f32 %v1218_v3, %v1217_v63  ;;  %v649_v5 = vadd.f32 %v648_v0, %v504_v1  ;;  %1364 = vmatmul.mubr.f32.gmra.mxu1 %v678_v2 }
 0x124   : > { %v1220_v6 = vpop.f32.mrf.mxu0 }
 0x125   : > { %v509_v8 = vadd.f32 %v1219_v4, %v1728_v41  ;;  %v679_v9 = vmax.f32 %v649_v5, 0.0 }
 0x126   : > { %v1221_v10 = vpop.f32.mrf.mxu0 }
 0x127   : > { %v1222_v11 = vadd.f32 %v1221_v10, %v1220_v6  ;;  %1366 = vmatprep.mubr.f32.mxu1 %v679_v9  ;;  %v654_v12 = vadd.f32 %v1312_v57, %v509_v8 }
 0x128   : > { %v1223_v13 = vpop.f32.mrf.mxu0 }
 0x129   : > { %v514_v15 = vadd.f32 %v1222_v11, %v1728_v41  ;;  %v680_v16 = vmax.f32 %v654_v12, 0.0 }
 0x12a   : > { %v1224_v17 = vpop.f32.mrf.mxu0 }
 0x12b   : > { %v1225_v18 = vadd.f32 %v1224_v17, %v1223_v13  ;;  %v659_v19 = vadd.f32 %v658_v14, %v514_v15  ;;  %1367 = vmatmul.mubr.f32.gmra.mxu1 %v680_v16 }
 0x12d   : > { %v519_v20 = vadd.f32 %v1225_v18, %v1728_v41  ;;  %v681_v21 = vmax.f32 %v659_v19, 0.0 }
 0x12f   : > { %1369 = vmatprep.mubr.f32.mxu1 %v681_v21  ;;  %v664_v22 = vadd.f32 %v1315_v7, %v519_v20 }
 0x131   : > { %v682_v23 = vmax.f32 %v664_v22, 0.0 }
 0x133   : > { %1370 = vmatmul.mubr.f32.gmra.mxu1 %v682_v23 }
 0x1bb   : > { %v1350_v25 = vpop.f32.mrf.mxu1 }
 0x1bc   : > { %v778_v26 = vadd.f32 %v1350_v25, %v1143_v24 }
 0x1bd   : > { %v772_v27 = vpop.f32.mrf.mxu1 }
 0x1be   : > { %853 = vmax.xlane.f32.xlu0 %v778_v26  ;;  %v773_v28 = vadd.f32 %v1143_v24, %v772_v27 }
 0x1c2   : > { %851 = vmax.xlane.f32.xlu0 %v773_v28 }
 0x1c3   : > { %v1353_v29 = vpop.f32.mrf.mxu1 }
 0x1c4   : > { %v788_v30 = vadd.f32 %v1353_v29, %v1143_v24 }
 0x1c5   : > { %v782_v31 = vpop.f32.mrf.mxu1 }
 0x1c6   : > { %857 = vmax.xlane.f32.xlu1 %v788_v30  ;;  %v783_v41 = vadd.f32 %v1143_v24, %v782_v31 }
 0x1ca   : > { %855 = vmax.xlane.f32.xlu1 %v783_v41 }
 0x1cb   : > { %v1356_v32 = vpop.f32.mrf.mxu1 }
 0x1cc   : > { %v798_v33 = vadd.f32 %v1356_v32, %v1143_v24 }
 0x1cd   : > { %v792_v34 = vpop.f32.mrf.mxu1 }
 0x1ce   : > { %v793_v35 = vadd.f32 %v1143_v24, %v792_v34  ;;  %861 = vmax.xlane.f32.xlu1 %v798_v33 }
 0x1d0   : > { %859 = vmax.xlane.f32.xlu0 %v793_v35 }
 0x1d3   : > { %v1359_v36 = vpop.f32.mrf.mxu1 }
 0x1d4   : > { %v808_v37 = vadd.f32 %v1359_v36, %v1143_v24 }
 0x1d5   : > { %v802_v38 = vpop.f32.mrf.mxu1 }
 0x1d6   : > { %v1749_v39 = vadd.f32 %v1143_v24, %v802_v38  ;;  %865 = vmax.xlane.f32.xlu1 %v808_v37 }
 0x1d8   : > { %863 = vmax.xlane.f32.xlu0 %v1749_v39 }
 0x1db   : > { %v1362_v40 = vpop.f32.mrf.mxu1 }
 0x1dc   : > { %v1752_v42 = vadd.f32 %v1362_v40, %v1143_v24 }
 0x1dd   : > { %v812_v43 = vpop.f32.mrf.mxu1 }
 0x1de   : > { %v1754_v44 = vadd.f32 %v1143_v24, %v812_v43  ;;  %869 = vmax.xlane.f32.xlu1 %v1752_v42 }
 0x1e0   : > { %867 = vmax.xlane.f32.xlu0 %v1754_v44 }
 0x1e3   : > { %v1365_v45 = vpop.f32.mrf.mxu1 }
 0x1e4   : > { %v1758_v46 = vadd.f32 %v1365_v45, %v1143_v24 }
 0x1e5   : > { %v822_v47 = vpop.f32.mrf.mxu1 }
 0x1e6   : > { %v1760_v48 = vadd.f32 %v1143_v24, %v822_v47  ;;  %873 = vmax.xlane.f32.xlu1 %v1758_v46 }
 0x1e8   : > { %871 = vmax.xlane.f32.xlu0 %v1760_v48 }
 0x1eb   : > { %v1368_v49 = vpop.f32.mrf.mxu1 }
 0x1ec   : > { %v1764_v50 = vadd.f32 %v1368_v49, %v1143_v24 }
 0x1ed   : > { %v832_v51 = vpop.f32.mrf.mxu1 }
 0x1ee   : > { %v1766_v52 = vadd.f32 %v1143_v24, %v832_v51  ;;  %877 = vmax.xlane.f32.xlu1 %v1764_v50 }
 0x1f0   : > { %875 = vmax.xlane.f32.xlu0 %v1766_v52 }
 0x1f3   : > { %v1371_v53 = vpop.f32.mrf.mxu1 }
 0x1f4   : > { %v1770_v54 = vadd.f32 %v1371_v53, %v1143_v24 }
 0x1f5   : > { %v842_v55 = vpop.f32.mrf.mxu1 }
 0x1f6   : > { %v1772_v56 = vadd.f32 %v1143_v24, %v842_v55  ;;  %881 = vmax.xlane.f32.xlu1 %v1770_v54 }
 0x1f8   : > { %879 = vmax.xlane.f32.xlu0 %v1772_v56 }
 0x247   : > { %v854_v57 = vpop.xlane.xlu0 %853 }
 0x248   : > { %v884_v58 = vsub.f32 %v778_v26, %v854_v57 }
 0x24a   : > { %v901_v59 = vmul.f32 1.442695, %v884_v58 }
 0x24b   : > { %v852_v60 = vpop.xlane.xlu0 %851 }
 0x24c   : > { %1381 = vpow2.f32 %v901_v59  ;;  %v883_v61 = vsub.f32 %v773_v28, %v852_v60 }
 0x24e   : > { %v899_v62 = vmul.f32 1.442695, %v883_v61 }
 0x24f   : > { %v858_v63 = vpop.xlane.xlu1 %857 }
 0x250   : > { %1383 = vpow2.f32 %v899_v62  ;;  %v886_v0 = vsub.f32 %v788_v30, %v858_v63 }
 0x252   : > { %v905_v1 = vmul.f32 1.442695, %v886_v0 }
 0x253   : > { %v856_v2 = vpop.xlane.xlu1 %855 }
 0x254   : > { %1385 = vpow2.f32 %v905_v1  ;;  %v885_v3 = vsub.f32 %v783_v41, %v856_v2 }
 0x256   : > { %v903_v4 = vmul.f32 1.442695, %v885_v3 }
 0x257   : > { %v862_v5 = vpop.xlane.xlu1 %861 }
 0x258   : > { %1387 = vpow2.f32 %v903_v4  ;;  %v888_v6 = vsub.f32 %v798_v33, %v862_v5 }
 0x259   : > { %v1776_v7 = vpop.eup %1381  ;;  %v860_v8 = vpop.xlane.xlu0 %859 }
 0x25a   : > { %v909_v9 = vmul.f32 1.442695, %v888_v6  ;;  %v887_v10 = vsub.f32 %v793_v35, %v860_v8  ;;  %933 = vadd.xlane.f32.xlu1 %v1776_v7 }
 0x25c   : > { %1389 = vpow2.f32 %v909_v9  ;;  %v907_v11 = vmul.f32 1.442695, %v887_v10 }
 0x25d   : > { %v1779_v12 = vpop.eup %1383 }
 0x25e   : > { %1391 = vpow2.f32 %v907_v11  ;;  %931 = vadd.xlane.f32.xlu0 %v1779_v12 }
 0x25f   : > { %v866_v13 = vpop.xlane.xlu1 %865 }
 0x260   : > { %v890_v14 = vsub.f32 %v808_v37, %v866_v13 }
 0x261   : > { %v1782_v15 = vpop.eup %1385  ;;  %v864_v16 = vpop.xlane.xlu0 %863 }
 0x262   : > { %v913_v17 = vmul.f32 1.442695, %v890_v14  ;;  %v889_v18 = vsub.f32 %v1749_v39, %v864_v16  ;;  %937 = vadd.xlane.f32.xlu1 %v1782_v15 }
 0x264   : > { %1393 = vpow2.f32 %v913_v17  ;;  %v911_v19 = vmul.f32 1.442695, %v889_v18 }
 0x265   : > { %v1786_v20 = vpop.eup %1387 }
 0x266   : > { %1395 = vpow2.f32 %v911_v19  ;;  %935 = vadd.xlane.f32.xlu0 %v1786_v20 }
 0x267   : > { %v870_v21 = vpop.xlane.xlu1 %869 }
 0x268   : > { %v892_v22 = vsub.f32 %v1752_v42, %v870_v21 }
 0x269   : > { %v1790_v23 = vpop.eup %1389  ;;  %v868_v24 = vpop.xlane.xlu0 %867 }
 0x26a   : > { %v917_v25 = vmul.f32 1.442695, %v892_v22  ;;  %v891_v26 = vsub.f32 %v1754_v44, %v868_v24  ;;  %941 = vadd.xlane.f32.xlu1 %v1790_v23 }
 0x26b   : > { %v1794_v27 = vpop.eup %1391 }
 0x26c   : > { %1397 = vpow2.f32 %v917_v25  ;;  %v915_v28 = vmul.f32 1.442695, %v891_v26  ;;  %939 = vadd.xlane.f32.xlu0 %v1794_v27 }
 0x26e   : > { %1399 = vpow2.f32 %v915_v28 }
 0x26f   : > { %v874_v29 = vpop.xlane.xlu1 %873 }
 0x270   : > { %v894_v30 = vsub.f32 %v1758_v46, %v874_v29 }
 0x271   : > { %v1798_v31 = vpop.eup %1393  ;;  %v872_v41 = vpop.xlane.xlu0 %871 }
 0x272   : > { %v921_v32 = vmul.f32 1.442695, %v894_v30  ;;  %v893_v33 = vsub.f32 %v1760_v48, %v872_v41  ;;  %945 = vadd.xlane.f32.xlu1 %v1798_v31 }
 0x273   : > { %v1802_v34 = vpop.eup %1395 }
 0x274   : > { %1401 = vpow2.f32 %v921_v32  ;;  %v919_v35 = vmul.f32 1.442695, %v893_v33  ;;  %943 = vadd.xlane.f32.xlu0 %v1802_v34 }
 0x276   : > { %1403 = vpow2.f32 %v919_v35 }
 0x277   : > { %v878_v36 = vpop.xlane.xlu1 %877 }
 0x278   : > { %v896_v37 = vsub.f32 %v1764_v50, %v878_v36 }
 0x279   : > { %v1806_v38 = vpop.eup %1397  ;;  %v876_v39 = vpop.xlane.xlu0 %875 }
 0x27a   : > { %v925_v40 = vmul.f32 1.442695, %v896_v37  ;;  %v895_v42 = vsub.f32 %v1766_v52, %v876_v39  ;;  %949 = vadd.xlane.f32.xlu1 %v1806_v38 }
 0x27b   : > { %v1810_v43 = vpop.eup %1399 }
 0x27c   : > { %1405 = vpow2.f32 %v925_v40  ;;  %v923_v44 = vmul.f32 1.442695, %v895_v42  ;;  %947 = vadd.xlane.f32.xlu0 %v1810_v43 }
 0x27e   : > { %1407 = vpow2.f32 %v923_v44 }
 0x27f   : > { %v882_v45 = vpop.xlane.xlu1 %881 }
 0x280   : > { %v898_v46 = vsub.f32 %v1770_v54, %v882_v45 }
 0x281   : > { %v1814_v47 = vpop.eup %1401  ;;  %v880_v48 = vpop.xlane.xlu0 %879 }
 0x282   : > { %v929_v49 = vmul.f32 1.442695, %v898_v46  ;;  %v897_v50 = vsub.f32 %v1772_v56, %v880_v48  ;;  %953 = vadd.xlane.f32.xlu1 %v1814_v47 }
 0x283   : > { %v1818_v51 = vpop.eup %1403 }
 0x284   : > { %1409 = vpow2.f32 %v929_v49  ;;  %v927_v52 = vmul.f32 1.442695, %v897_v50  ;;  %951 = vadd.xlane.f32.xlu0 %v1818_v51 }
 0x286   : > { %1411 = vpow2.f32 %v927_v52 }
 0x289   : > { %v1821_v53 = vpop.eup %1405 }
 0x28a   : > { %957 = vadd.xlane.f32.xlu1 %v1821_v53 }
 0x28b   : > { %v1824_v54 = vpop.eup %1407 }
 0x28c   : > { %955 = vadd.xlane.f32.xlu0 %v1824_v54 }
 0x291   : > { %v1827_v55 = vpop.eup %1409 }
 0x292   : > { %961 = vadd.xlane.f32.xlu1 %v1827_v55 }
 0x293   : > { %v1830_v56 = vpop.eup %1411 }
 0x294   : > { %959 = vadd.xlane.f32.xlu0 %v1830_v56 }
 0x2e3   : > { %v934_v57 = vpop.xlane.xlu1 %933 }
 0x2e4   : > { %1413 = vrcp.f32 %v934_v57 }
 0x2e7   : > { %v932_v58 = vpop.xlane.xlu0 %931 }
 0x2e8   : > { %1415 = vrcp.f32 %v932_v58 }
 0x2eb   : > { %v938_v59 = vpop.xlane.xlu1 %937 }
 0x2ec   : > { %1417 = vrcp.f32 %v938_v59 }
 0x2ef   : > { %v936_v60 = vpop.xlane.xlu0 %935 }
 0x2f0   : > { %1419 = vrcp.f32 %v936_v60 }
 0x2f1   : > { %v1414_v61 = vpop.eup %1413 }
 0x2f2   : > { %v980_v62 = vmul.f32 %v1414_v61, %v934_v57 }
 0x2f3   : > { %v942_v63 = vpop.xlane.xlu1 %941 }
 0x2f4   : > { %v996_v0 = vsub.f32 2.0, %v980_v62  ;;  %1421 = vrcp.f32 %v942_v63 }
 0x2f5   : > { %v1416_v1 = vpop.eup %1415  ;;  %v940_v2 = vpop.xlane.xlu0 %939 }
 0x2f6   : > { %v1012_v3 = vmul.f32 %v1414_v61, %v996_v0  ;;  %v979_v4 = vmul.f32 %v1416_v1, %v932_v58  ;;  %1423 = vrcp.f32 %v940_v2 }
 0x2f8   : > { %v1028_v5 = vmul.f32 %v1776_v7, %v1012_v3  ;;  %v995_v6 = vsub.f32 2.0, %v979_v4 }
 0x2f9   : > { %v1418_v8 = vpop.eup %1417 }
 0x2fa   : > { %1045 = vst.msk [vmem:[%s1837_s27 + $0x8] sm:$0xff] %vm1043_vm2, %v1028_v5  ;;  %v1011_v9 = vmul.f32 %v1416_v1, %v995_v6  ;;  %v982_v10 = vmul.f32 %v1418_v8, %v938_v59 }
 0x2fb   : > { %v946_v11 = vpop.xlane.xlu1 %945 }
 0x2fc   : > { %v1027_v13 = vmul.f32 %v1779_v12, %v1011_v9  ;;  %v998_v14 = vsub.f32 2.0, %v982_v10  ;;  %1425 = vrcp.f32 %v946_v11 }
 0x2fd   : > { %v1420_v16 = vpop.eup %1419  ;;  %v944_v17 = vpop.xlane.xlu0 %943 }
 0x2fe   : > { %1044 = vst.msk [vmem:[%s1837_s27] sm:$0xff] %vm1043_vm2, %v1027_v13  ;;  %v1014_v18 = vmul.f32 %v1418_v8, %v998_v14  ;;  %v981_v19 = vmul.f32 %v1420_v16, %v936_v60  ;;  %1427 = vrcp.f32 %v944_v17 }
 0x300   : > { %v1030_v7 = vmul.f32 %v1782_v15, %v1014_v18  ;;  %v997_v21 = vsub.f32 2.0, %v981_v19 }
 0x301   : > { %v1422_v22 = vpop.eup %1421 }
 0x302   : > { %1047 = vst.msk [vmem:[%s1837_s27 + $0x18] sm:$0xff] %vm1043_vm2, %v1030_v7  ;;  %v1013_v24 = vmul.f32 %v1420_v16, %v997_v21  ;;  %v984_v25 = vmul.f32 %v1422_v22, %v942_v63 }
 0x303   : > { %v1424_v12 = vpop.eup %1423  ;;  %v950_v26 = vpop.xlane.xlu1 %949 }
 0x304   : > { %v1029_v28 = vmul.f32 %v1786_v20, %v1013_v24  ;;  %v1000_v29 = vsub.f32 2.0, %v984_v25  ;;  %v983_v30 = vmul.f32 %v1424_v12, %v940_v2  ;;  %1429 = vrcp.f32 %v950_v26 }
 0x305   : > { %v948_v41 = vpop.xlane.xlu0 %947 }
 0x306   : > { %1046 = vst.msk [vmem:[%s1837_s27 + $0x10] sm:$0xff] %vm1043_vm2, %v1029_v28  ;;  %v1016_v32 = vmul.f32 %v1422_v22, %v1000_v29  ;;  %v999_v15 = vsub.f32 2.0, %v983_v30  ;;  %1431 = vrcp.f32 %v948_v41 }
 0x308   : > { %v1032_v33 = vmul.f32 %v1790_v23, %v1016_v32  ;;  %v1015_v35 = vmul.f32 %v1424_v12, %v999_v15 }
 0x309   : > { %v1426_v36 = vpop.eup %1425 }
 0x30a   : > { %1049 = vst.msk [vmem:[%s1837_s27 + $0x28] sm:$0xff] %vm1043_vm2, %v1032_v33  ;;  %v1031_v37 = vmul.f32 %v1794_v27, %v1015_v35  ;;  %v986_v20 = vmul.f32 %v1426_v36, %v946_v11 }
 0x30b   : > { %v1428_v39 = vpop.eup %1427  ;;  %v954_v40 = vpop.xlane.xlu1 %953 }
 0x30c   : > { %1048 = vst.msk [vmem:[%s1837_s27 + $0x20] sm:$0xff] %vm1043_vm2, %v1031_v37  ;;  %v1002_v42 = vsub.f32 2.0, %v986_v20  ;;  %v985_v44 = vmul.f32 %v1428_v39, %v944_v17  ;;  %1433 = vrcp.f32 %v954_v40 }
 0x30d   : > { %v952_v45 = vpop.xlane.xlu0 %951 }
 0x30e   : > { %v1018_v46 = vmul.f32 %v1426_v36, %v1002_v42  ;;  %v1001_v48 = vsub.f32 2.0, %v985_v44  ;;  %1435 = vrcp.f32 %v952_v45 }
 0x310   : > { %v1034_v23 = vmul.f32 %v1798_v31, %v1018_v46  ;;  %v1017_v49 = vmul.f32 %v1428_v39, %v1001_v48 }
 0x311   : > { %v1430_v50 = vpop.eup %1429 }
 0x312   : > { %1051 = vst.msk [vmem:[%s1837_s27 + $0x38] sm:$0xff] %vm1043_vm2, %v1034_v23  ;;  %v1033_v27 = vmul.f32 %v1802_v34, %v1017_v49  ;;  %v988_v52 = vmul.f32 %v1430_v50, %v950_v26 }
 0x313   : > { %v1432_v57 = vpop.eup %1431  ;;  %v958_v58 = vpop.xlane.xlu1 %957 }
 0x314   : > { %1050 = vst.msk [vmem:[%s1837_s27 + $0x30] sm:$0xff] %vm1043_vm2, %v1033_v27  ;;  %v1004_v59 = vsub.f32 2.0, %v988_v52  ;;  %v987_v60 = vmul.f32 %v1432_v57, %v948_v41  ;;  %1437 = vrcp.f32 %v958_v58 }
 0x315   : > { %v956_v61 = vpop.xlane.xlu0 %955 }
 0x316   : > { %v1020_v62 = vmul.f32 %v1430_v50, %v1004_v59  ;;  %v1003_v63 = vsub.f32 2.0, %v987_v60  ;;  %1439 = vrcp.f32 %v956_v61 }
 0x318   : > { %v1036_v31 = vmul.f32 %v1806_v38, %v1020_v62  ;;  %v1019_v0 = vmul.f32 %v1432_v57, %v1003_v63 }
 0x319   : > { %v1434_v1 = vpop.eup %1433 }
 0x31a   : > { %1053 = vst.msk [vmem:[%s1837_s27 + $0x48] sm:$0xff] %vm1043_vm2, %v1036_v31  ;;  %v1035_v34 = vmul.f32 %v1810_v43, %v1019_v0  ;;  %v990_v2 = vmul.f32 %v1434_v1, %v954_v40 }
 0x31b   : > { %v1436_v3 = vpop.eup %1435  ;;  %v962_v4 = vpop.xlane.xlu1 %961 }
 0x31c   : > { %1052 = vst.msk [vmem:[%s1837_s27 + $0x40] sm:$0xff] %vm1043_vm2, %v1035_v34  ;;  %v1006_v5 = vsub.f32 2.0, %v990_v2  ;;  %v989_v6 = vmul.f32 %v1436_v3, %v952_v45  ;;  %1441 = vrcp.f32 %v962_v4 }
 0x31d   : > { %v960_v8 = vpop.xlane.xlu0 %959 }
 0x31e   : > { %v1022_v9 = vmul.f32 %v1434_v1, %v1006_v5  ;;  %v1005_v10 = vsub.f32 2.0, %v989_v6  ;;  %1443 = vrcp.f32 %v960_v8 }
 0x320   : > { %v1038_v38 = vmul.f32 %v1814_v47, %v1022_v9  ;;  %v1021_v11 = vmul.f32 %v1436_v3, %v1005_v10 }
 0x321   : > { %v1438_v13 = vpop.eup %1437 }
 0x322   : > { %1055 = vst.msk [vmem:[%s1837_s27 + $0x58] sm:$0xff] %vm1043_vm2, %v1038_v38  ;;  %v1037_v43 = vmul.f32 %v1818_v51, %v1021_v11  ;;  %v992_v14 = vmul.f32 %v1438_v13, %v958_v58 }
 0x323   : > { %v1440_v16 = vpop.eup %1439 }
 0x324   : > { %1054 = vst.msk [vmem:[%s1837_s27 + $0x50] sm:$0xff] %vm1043_vm2, %v1037_v43  ;;  %v1008_v17 = vsub.f32 2.0, %v992_v14  ;;  %v991_v18 = vmul.f32 %v1440_v16, %v956_v61 }
 0x326   : > { %v1024_v19 = vmul.f32 %v1438_v13, %v1008_v17  ;;  %v1007_v7 = vsub.f32 2.0, %v991_v18 }
 0x328   : > { %v1040_v21 = vmul.f32 %v1821_v53, %v1024_v19  ;;  %v1023_v47 = vmul.f32 %v1440_v16, %v1007_v7 }
 0x329   : > { %v1442_v22 = vpop.eup %1441 }
 0x32a   : > { %1057 = vst.msk [vmem:[%s1837_s27 + $0x68] sm:$0xff] %vm1043_vm2, %v1040_v21  ;;  %v1039_v24 = vmul.f32 %v1824_v54, %v1023_v47  ;;  %v994_v25 = vmul.f32 %v1442_v22, %v962_v4 }
 0x32b   : > { %v1444_v51 = vpop.eup %1443 }
 0x32c   : > { %1056 = vst.msk [vmem:[%s1837_s27 + $0x60] sm:$0xff] %vm1043_vm2, %v1039_v24  ;;  %v1010_v12 = vsub.f32 2.0, %v994_v25  ;;  %v993_v26 = vmul.f32 %v1444_v51, %v960_v8 }
 0x32e   : > { %v1026_v28 = vmul.f32 %v1442_v22, %v1010_v12  ;;  %v1009_v29 = vsub.f32 2.0, %v993_v26 }
 0x330   : > { %v1042_v30 = vmul.f32 %v1827_v55, %v1026_v28  ;;  %v1025_v41 = vmul.f32 %v1444_v51, %v1009_v29 }
 0x332   : > { %1059 = vst.msk [vmem:[%s1837_s27 + $0x78] sm:$0xff] %vm1043_vm2, %v1042_v30  ;;  %v1041_v53 = vmul.f32 %v1830_v56, %v1025_v41 }
 0x334   : > { %1058 = vst.msk [vmem:[%s1837_s27 + $0x70] sm:$0xff] %vm1043_vm2, %v1041_v53 }
 0x335 PF: > { %s15_s18 = sadd.s32 1, %s1451_s18  }
 0x336   : > { %p12_p4 = scmp.ge.s32.totalorder %s15_s18, 4  }
 0x338   :  { %14 = sbr.rel (!%p12_p4) target bundleno = 1 (0x1), region = 70 }

</bundles_post_ra>
